<compile_context>
chip_gen: v5e
topology: v5e:2x2
jax: 0.10.0
libtpu: 0.0.40
codegen_flags: <defaults>
</compile_context>

<pallas_src>
import functools

import jax
import jax.numpy as jnp
from jax.experimental import pallas as pl
from jax.experimental.pallas import tpu as pltpu

_LANE = 128
_NEG_MASK = -1e30  # final-bias value for padded action lanes (exp -> exactly 0)


def _round_up(n, m):
    return ((n + m - 1) // m) * m


def _actor_kernel(n_mid, x_ref, w0_ref, b0_ref, *refs):
    """x_ref: [tb, Ds] f32; w* refs: bf16; b* refs: f32; out_ref: [tb, Do] f32."""
    if n_mid > 0:
        wm_ref, bm_ref, wl_ref, bl_ref, out_ref = refs
    else:
        wl_ref, bl_ref, out_ref = refs

    # First hidden layer: bf16 MXU matmul, f32 accumulate / bias / ReLU.
    h = jnp.dot(x_ref[...].astype(jnp.bfloat16), w0_ref[...],
                preferred_element_type=jnp.float32) + b0_ref[...]
    h = jnp.maximum(h, 0.0)

    # Remaining hidden layers (static Python loop -> fully unrolled).
    for i in range(n_mid):
        h = jnp.dot(h.astype(jnp.bfloat16), wm_ref[i],
                    preferred_element_type=jnp.float32) + bm_ref[i]
        h = jnp.maximum(h, 0.0)

    # Output layer. Padded action lanes of bl hold -1e30, so exp() underflows
    # to exactly 0 and they never contribute to the softmax denominator.
    logits = jnp.dot(h.astype(jnp.bfloat16), wl_ref[...],
                     preferred_element_type=jnp.float32) + bl_ref[...]
    m = jnp.max(logits, axis=-1, keepdims=True)
    e = jnp.exp(logits - m)
    # Exact division so rows sum to 1 to f32 precision (required downstream).
    out_ref[...] = e / jnp.sum(e, axis=-1, keepdims=True)


def pack_actor_params(weights, biases, num_state, num_action):
    """One-time packing of Actor params into padded, lane-dense blocks.

    weights[i]: [in_i, out_i] (= PyTorch W.T), biases[i]: [out_i].
    Weights are stored in bf16 (MXU-native), biases stay f32.
    """
    k = len(weights) - 1                        # number of hidden (ReLU) layers
    hidden = [w.shape[1] for w in weights[:-1]]
    ds = _round_up(num_state, _LANE)
    dh = _round_up(max(hidden), _LANE)
    do = _round_up(num_action, _LANE)

    def pad_w(w, rows, cols):
        w = jnp.asarray(w, jnp.bfloat16)
        return jnp.pad(w, ((0, rows - w.shape[0]), (0, cols - w.shape[1])))

    def pad_b(b, cols, fill=0.0):
        b = jnp.reshape(jnp.asarray(b, jnp.float32), (-1,))
        return jnp.pad(b, (0, cols - b.shape[0]),
                       constant_values=fill).reshape(1, cols)

    w0 = pad_w(weights[0], ds, dh)
    b0 = pad_b(biases[0], dh)
    n_mid = k - 1
    if n_mid > 0:
        wm = jnp.stack([pad_w(w, dh, dh) for w in weights[1:k]])
        bm = jnp.stack([pad_b(b, dh) for b in biases[1:k]])
    else:
        wm, bm = None, None
    wl = pad_w(weights[k], dh, do)
    # Mask padded logit lanes so softmax ignores them.
    bl = pad_b(biases[k], do, fill=_NEG_MASK)

    return dict(w0=w0, b0=b0, wm=wm, bm=bm, wl=wl, bl=bl, n_mid=n_mid,
                num_state=num_state, num_action=num_action,
                ds=ds, dh=dh, do=do)


def _pick_batch_tile(batch, widest):
    # VMEM-aware cap: double-buffered x/out tiles + resident params must stay
    # well under v7x's 64 MiB (v5e/v6e have 128 MiB and are always fine here).
    if widest >= 2048:
        cap = 256
    elif widest >= 1024:
        cap = 512
    else:
        cap = 1024
    # Ensure >= 2 grid steps for non-trivial batches so the "parallel" grid
    # axis can shard across both v7x TensorCores.
    if batch > 256:
        cap = min(cap, _round_up(pl.cdiv(batch, 2), 8))
    tb = min(batch, cap)
    # MXU row granularity: multiples of 256 when large, else multiples of 8.
    if tb >= 512:
        tb = (tb // 256) * 256
    return _round_up(max(tb, 1), 8)


def actor_forward(x, params, *, batch_tile=None):
    """Actor forward: x [B, num_state] -> softmax probs [B, num_action]."""
    B = x.shape[0]
    ds, dh, do = params["ds"], params["dh"], params["do"]
    num_state, num_action = params["num_state"], params["num_action"]
    n_mid = params["n_mid"]
    w0, b0, wm, bm, wl, bl = (params[k] for k in ("w0", "b0", "wm", "bm", "wl", "bl"))

    if batch_tile is None:
        tb = _pick_batch_tile(B, max(ds, dh, do))
    else:
        tb = _round_up(max(1, min(batch_tile, B)), 8)
    bp = _round_up(B, tb)

    # Pad batch rows and input feature lanes with zeros.
    x_pad = jnp.pad(x.astype(jnp.float32), ((0, bp - B), (0, ds - num_state)))

    grid = (bp // tb,)
    args = [x_pad, w0, b0] + ([wm, bm] if n_mid > 0 else []) + [wl, bl]

    # Explicit scoped-VMEM budget: params (x2 to also cover the
    # double-buffered fallback) + double-buffered x/out tiles + live f32
    # intermediates, with headroom; capped at v7x's 64 MiB physical VMEM.
    # TODO(synk): for Dh large enough that bf16 weights exceed ~40 MiB, stream
    # one layer at a time from HBM (pl.ANY + pltpu.make_async_copy) instead of
    # keeping all layers resident.
    param_bytes = sum(int(a.size) * a.dtype.itemsize
                      for a in (w0, b0, wl, bl) + ((wm, bm) if n_mid > 0 else ()))
    io_bytes = 2 * tb * ds * 4 + 2 * tb * do * 4
    work_bytes = 4 * tb * max(dh, do) * 4
    vmem_limit = int(min(max(2 * param_bytes + io_bytes + work_bytes + (8 << 20),
                             32 << 20), 64 << 20))

    def build(single_buffer_params):
        pm_kwargs = {}
        if single_buffer_params and hasattr(pl, "Buffered"):
            # Grid-invariant blocks: fetched once, one buffer is enough.
            pm_kwargs = dict(pipeline_mode=pl.Buffered(1))

        def const_spec(shape):
            nd = len(shape)
            return pl.BlockSpec(shape, lambda i: (0,) * nd, **pm_kwargs)

        in_specs = [pl.BlockSpec((tb, ds), lambda i: (i, 0)),
                    const_spec(w0.shape), const_spec(b0.shape)]
        if n_mid > 0:
            in_specs += [const_spec(wm.shape), const_spec(bm.shape)]
        in_specs += [const_spec(wl.shape), const_spec(bl.shape)]

        return pl.pallas_call(
            functools.partial(_actor_kernel, n_mid),
            out_shape=jax.ShapeDtypeStruct((bp, do), jnp.float32),
            grid_spec=pltpu.PrefetchScalarGridSpec(
                num_scalar_prefetch=0,
                grid=grid,
                in_specs=in_specs,
                out_specs=pl.BlockSpec((tb, do), lambda i: (i, 0)),
            ),
            compiler_params=pltpu.CompilerParams(
                dimension_semantics=("parallel",),
                vmem_limit_bytes=vmem_limit,
            ),
        )

    try:
        out_pad = build(True)(*args)
    except Exception:
        # Some jax versions / interpret paths reject pipeline_mode=Buffered(1);
        # fall back to default double-buffered params (identical numerics).
        out_pad = build(False)(*args)

    return out_pad[:B, :num_action]


def init_actor_params(key, num_state, num_action, layers):
    """Deterministic synthetic init matching nn.Linear fan-in uniform init.

    Returns weights as [in, out] (PyTorch W.T) and biases as [out]."""
    dims = [num_state] + list(layers) + [num_action]
    weights, biases = [], []
    for i in range(len(dims) - 1):
        fan_in, fan_out = dims[i], dims[i + 1]
        key, kw, kb = jax.random.split(key, 3)
        bound = 1.0 / jnp.sqrt(jnp.float32(fan_in))
        w = jax.random.uniform(kw, (fan_in, fan_out), jnp.float32, -bound, bound)
        b = jax.random.uniform(kb, (fan_out,), jnp.float32, -bound, bound)
        weights.append(w)
        biases.append(b)
    return weights, biases


def actor_forward_ref(x, weights, biases):
    """Pure-JAX f32 reference for correctness checking."""
    h = x
    for w, b in zip(weights[:-1], biases[:-1]):
        h = jnp.maximum(h @ w + b, 0.0)
    logits = h @ weights[-1] + biases[-1]
    return jax.nn.softmax(logits, axis=1)


if __name__ == "__main__":
    # Small shapes consistent with the module: batch=8, num_state=32,
    # hidden layers=[32, 32], num_action=8.
    batch = 8
    num_state = 32
    layers = [32, 32]
    num_action = 8

    key = jax.random.PRNGKey(0)
    key, kx = jax.random.split(key)
    x = jax.random.normal(kx, (batch, num_state), jnp.float32)

    weights, biases = init_actor_params(key, num_state, num_action, layers)
    params = pack_actor_params(weights, biases, num_state, num_action)  # one-time

    out = actor_forward(x, params)
    out = jax.block_until_ready(out)

    ref = actor_forward_ref(x, weights, biases)
    assert out.shape == (batch, num_action)
    # bf16 MXU matmuls (f32 accumulation) vs. a pure-f32 reference -> slightly
    # relaxed tolerance; probabilities are <= 1 so atol dominates.
    assert jnp.allclose(out, ref, atol=2e-3, rtol=2e-3), (
        "Pallas output mismatch vs reference"
    )
    # Exact softmax division: every row sums to 1 to f32 precision.
    assert jnp.allclose(jnp.sum(out, axis=1), jnp.ones((batch,)), atol=1e-5)

    print("KERNEL_OK")
</pallas_src>

<mosaic_0001>
module attributes {stable_mosaic.version = 11 : i64} {
  func.func @_actor_kernel(%arg0: i32, %arg1: memref<8x128xf32, #tpu.memory_space<vmem>>, %arg2: memref<128x128xbf16, #tpu.memory_space<vmem>>, %arg3: memref<1x128xf32, #tpu.memory_space<vmem>>, %arg4: memref<1x128x128xbf16, #tpu.memory_space<vmem>>, %arg5: memref<1x1x128xf32, #tpu.memory_space<vmem>>, %arg6: memref<128x128xbf16, #tpu.memory_space<vmem>>, %arg7: memref<1x128xf32, #tpu.memory_space<vmem>>, %arg8: memref<8x128xf32, #tpu.memory_space<vmem>>) attributes {dimension_semantics = [#tpu.dimension_semantics<parallel>], iteration_bounds = array<i64: 1>, scalar_prefetch = 0 : i64, scratch_operands = 0 : i64, tpu.core_type = #tpu.core_type<tc>, window_params = [{transform_indices = @transform_0, window_bounds = array<i64: 8, 128>}, {pipeline_mode = #tpu.pipeline_mode<synchronous>, transform_indices = @transform_1, window_bounds = array<i64: 128, 128>}, {pipeline_mode = #tpu.pipeline_mode<synchronous>, transform_indices = @transform_2, window_bounds = array<i64: 1, 128>}, {pipeline_mode = #tpu.pipeline_mode<synchronous>, transform_indices = @transform_3, window_bounds = array<i64: 1, 128, 128>}, {pipeline_mode = #tpu.pipeline_mode<synchronous>, transform_indices = @transform_4, window_bounds = array<i64: 1, 1, 128>}, {pipeline_mode = #tpu.pipeline_mode<synchronous>, transform_indices = @transform_5, window_bounds = array<i64: 128, 128>}, {pipeline_mode = #tpu.pipeline_mode<synchronous>, transform_indices = @transform_6, window_bounds = array<i64: 1, 128>}, {transform_indices = @transform_7, window_bounds = array<i64: 8, 128>}]} {
    %c0 = arith.constant 0 : index
    %c0_0 = arith.constant 0 : index
    %0 = vector.load %arg1[%c0, %c0_0] : memref<8x128xf32, #tpu.memory_space<vmem>>, vector<8x128xf32>
    %1 = arith.truncf %0 : vector<8x128xf32> to vector<8x128xbf16>
    %c0_1 = arith.constant 0 : index
    %c0_2 = arith.constant 0 : index
    %2 = vector.load %arg2[%c0_1, %c0_2] : memref<128x128xbf16, #tpu.memory_space<vmem>>, vector<128x128xbf16>
    %cst = arith.constant dense<0.000000e+00> : vector<8x128xf32>
    %3 = tpu.matmul %1, %2, %cst {dimension_numbers = #tpu.dot_dimension_numbers<[1], [0], [0], [1], [0, 0, 1, 1], [], []>} : vector<8x128xbf16>, vector<128x128xbf16>, vector<8x128xf32> -> vector<8x128xf32>
    %c0_3 = arith.constant 0 : index
    %c0_4 = arith.constant 0 : index
    %4 = vector.load %arg3[%c0_3, %c0_4] : memref<1x128xf32, #tpu.memory_space<vmem>>, vector<1x128xf32>
    %5 = vector.broadcast %4 : vector<1x128xf32> to vector<8x128xf32>
    %6 = arith.addf %3, %5 : vector<8x128xf32>
    %cst_5 = arith.constant 0.000000e+00 : f32
    %7 = vector.broadcast %cst_5 : f32 to vector<8x128xf32>
    %8 = arith.maximumf %6, %7 : vector<8x128xf32>
    %9 = arith.truncf %8 : vector<8x128xf32> to vector<8x128xbf16>
    %c0_6 = arith.constant 0 : index
    %c0_7 = arith.constant 0 : index
    %c0_8 = arith.constant 0 : index
    %10 = vector.load %arg4[%c0_6, %c0_7, %c0_8] : memref<1x128x128xbf16, #tpu.memory_space<vmem>>, vector<1x128x128xbf16>
    %11 = vector.shape_cast %10 : vector<1x128x128xbf16> to vector<128x128xbf16>
    %cst_9 = arith.constant dense<0.000000e+00> : vector<8x128xf32>
    %12 = tpu.matmul %9, %11, %cst_9 {dimension_numbers = #tpu.dot_dimension_numbers<[1], [0], [0], [1], [0, 0, 1, 1], [], []>} : vector<8x128xbf16>, vector<128x128xbf16>, vector<8x128xf32> -> vector<8x128xf32>
    %c0_10 = arith.constant 0 : index
    %c0_11 = arith.constant 0 : index
    %c0_12 = arith.constant 0 : index
    %13 = vector.load %arg5[%c0_10, %c0_11, %c0_12] : memref<1x1x128xf32, #tpu.memory_space<vmem>>, vector<1x1x128xf32>
    %14 = vector.shape_cast %13 : vector<1x1x128xf32> to vector<1x128xf32>
    %15 = vector.broadcast %14 : vector<1x128xf32> to vector<8x128xf32>
    %16 = arith.addf %12, %15 : vector<8x128xf32>
    %cst_13 = arith.constant 0.000000e+00 : f32
    %17 = vector.broadcast %cst_13 : f32 to vector<8x128xf32>
    %18 = arith.maximumf %16, %17 : vector<8x128xf32>
    %19 = arith.truncf %18 : vector<8x128xf32> to vector<8x128xbf16>
    %c0_14 = arith.constant 0 : index
    %c0_15 = arith.constant 0 : index
    %20 = vector.load %arg6[%c0_14, %c0_15] : memref<128x128xbf16, #tpu.memory_space<vmem>>, vector<128x128xbf16>
    %cst_16 = arith.constant dense<0.000000e+00> : vector<8x128xf32>
    %21 = tpu.matmul %19, %20, %cst_16 {dimension_numbers = #tpu.dot_dimension_numbers<[1], [0], [0], [1], [0, 0, 1, 1], [], []>} : vector<8x128xbf16>, vector<128x128xbf16>, vector<8x128xf32> -> vector<8x128xf32>
    %c0_17 = arith.constant 0 : index
    %c0_18 = arith.constant 0 : index
    %22 = vector.load %arg7[%c0_17, %c0_18] : memref<1x128xf32, #tpu.memory_space<vmem>>, vector<1x128xf32>
    %23 = vector.broadcast %22 : vector<1x128xf32> to vector<8x128xf32>
    %24 = arith.addf %21, %23 : vector<8x128xf32>
    %cst_19 = arith.constant dense<0xFF800000> : vector<8xf32>
    %25 = vector.multi_reduction <maximumf>, %24, %cst_19 [1] : vector<8x128xf32> to vector<8xf32>
    %26 = vector.shape_cast %25 : vector<8xf32> to vector<8x1xf32>
    %27 = vector.broadcast %26 : vector<8x1xf32> to vector<8x128xf32>
    %28 = arith.subf %24, %27 : vector<8x128xf32>
    %29 = math.exp %28 : vector<8x128xf32>
    %cst_20 = arith.constant dense<0.000000e+00> : vector<8xf32>
    %30 = vector.multi_reduction <add>, %29, %cst_20 [1] : vector<8x128xf32> to vector<8xf32>
    %31 = vector.shape_cast %30 : vector<8xf32> to vector<8x1xf32>
    %32 = vector.broadcast %31 : vector<8x1xf32> to vector<8x128xf32>
    %33 = arith.divf %29, %32 : vector<8x128xf32>
    %c0_21 = arith.constant 0 : index
    %c0_22 = arith.constant 0 : index
    %34 = vector.load %arg8[%c0_21, %c0_22] : memref<8x128xf32, #tpu.memory_space<vmem>>, vector<8x128xf32>
    tpu.vector_store %arg8[%c0_21, %c0_22], %33 {strides = array<i32>} : memref<8x128xf32, #tpu.memory_space<vmem>>, vector<8x128xf32>,
    return
  }
  func.func @transform_0(%arg0: i32) -> (i32, i32) {
    %c0_i32 = arith.constant 0 : i32
    %c0_i32_0 = arith.constant 0 : i32
    return %arg0, %c0_i32 : i32, i32
  }
  func.func @transform_1(%arg0: i32) -> (i32, i32) {
    %c0_i32 = arith.constant 0 : i32
    %c0_i32_0 = arith.constant 0 : i32
    %c0_i32_1 = arith.constant 0 : i32
    return %c0_i32, %c0_i32_0 : i32, i32
  }
  func.func @transform_2(%arg0: i32) -> (i32, i32) {
    %c0_i32 = arith.constant 0 : i32
    %c0_i32_0 = arith.constant 0 : i32
    %c0_i32_1 = arith.constant 0 : i32
    return %c0_i32, %c0_i32_0 : i32, i32
  }
  func.func @transform_3(%arg0: i32) -> (i32, i32, i32) {
    %c0_i32 = arith.constant 0 : i32
    %c0_i32_0 = arith.constant 0 : i32
    %c0_i32_1 = arith.constant 0 : i32
    %c0_i32_2 = arith.constant 0 : i32
    return %c0_i32, %c0_i32_0, %c0_i32_1 : i32, i32, i32
  }
  func.func @transform_4(%arg0: i32) -> (i32, i32, i32) {
    %c0_i32 = arith.constant 0 : i32
    %c0_i32_0 = arith.constant 0 : i32
    %c0_i32_1 = arith.constant 0 : i32
    %c0_i32_2 = arith.constant 0 : i32
    return %c0_i32, %c0_i32_0, %c0_i32_1 : i32, i32, i32
  }
  func.func @transform_5(%arg0: i32) -> (i32, i32) {
    %c0_i32 = arith.constant 0 : i32
    %c0_i32_0 = arith.constant 0 : i32
    %c0_i32_1 = arith.constant 0 : i32
    return %c0_i32, %c0_i32_0 : i32, i32
  }
  func.func @transform_6(%arg0: i32) -> (i32, i32) {
    %c0_i32 = arith.constant 0 : i32
    %c0_i32_0 = arith.constant 0 : i32
    %c0_i32_1 = arith.constant 0 : i32
    return %c0_i32, %c0_i32_0 : i32, i32
  }
  func.func @transform_7(%arg0: i32) -> (i32, i32) {
    %c0_i32 = arith.constant 0 : i32
    %c0_i32_0 = arith.constant 0 : i32
    return %arg0, %c0_i32 : i32, i32
  }
}

module attributes {stable_mosaic.version = 11 : i64} {
  func.func @_actor_kernel(%arg0: i32, %arg1: memref<8x128xf32, #tpu.memory_space<vmem>>, %arg2: memref<128x128xbf16, #tpu.memory_space<vmem>>, %arg3: memref<1x128xf32, #tpu.memory_space<vmem>>, %arg4: memref<1x128x128xbf16, #tpu.memory_space<vmem>>, %arg5: memref<1x1x128xf32, #tpu.memory_space<vmem>>, %arg6: memref<128x128xbf16, #tpu.memory_space<vmem>>, %arg7: memref<1x128xf32, #tpu.memory_space<vmem>>, %arg8: memref<8x128xf32, #tpu.memory_space<vmem>>) attributes {dimension_semantics = [#tpu.dimension_semantics<parallel>], iteration_bounds = array<i64: 1>, scalar_prefetch = 0 : i64, scratch_operands = 0 : i64, tpu.core_type = #tpu.core_type<tc>, window_params = [{transform_indices = @transform_0, window_bounds = array<i64: 8, 128>}, {pipeline_mode = #tpu.pipeline_mode<synchronous>, transform_indices = @transform_1, window_bounds = array<i64: 128, 128>}, {pipeline_mode = #tpu.pipeline_mode<synchronous>, transform_indices = @transform_2, window_bounds = array<i64: 1, 128>}, {pipeline_mode = #tpu.pipeline_mode<synchronous>, transform_indices = @transform_3, window_bounds = array<i64: 1, 128, 128>}, {pipeline_mode = #tpu.pipeline_mode<synchronous>, transform_indices = @transform_4, window_bounds = array<i64: 1, 1, 128>}, {pipeline_mode = #tpu.pipeline_mode<synchronous>, transform_indices = @transform_5, window_bounds = array<i64: 128, 128>}, {pipeline_mode = #tpu.pipeline_mode<synchronous>, transform_indices = @transform_6, window_bounds = array<i64: 1, 128>}, {transform_indices = @transform_7, window_bounds = array<i64: 8, 128>}]} {
    %c0 = arith.constant 0 : index
    %c0_0 = arith.constant 0 : index
    %0 = vector.load %arg1[%c0, %c0_0] : memref<8x128xf32, #tpu.memory_space<vmem>>, vector<8x128xf32>
    %1 = arith.truncf %0 : vector<8x128xf32> to vector<8x128xbf16>
    %c0_1 = arith.constant 0 : index
    %c0_2 = arith.constant 0 : index
    %2 = vector.load %arg2[%c0_1, %c0_2] : memref<128x128xbf16, #tpu.memory_space<vmem>>, vector<128x128xbf16>
    %cst = arith.constant dense<0.000000e+00> : vector<8x128xf32>
    %3 = tpu.matmul %1, %2, %cst {dimension_numbers = #tpu.dot_dimension_numbers<[1], [0], [0], [1], [0, 0, 1, 1], [], []>} : vector<8x128xbf16>, vector<128x128xbf16>, vector<8x128xf32> -> vector<8x128xf32>
    %c0_3 = arith.constant 0 : index
    %c0_4 = arith.constant 0 : index
    %4 = vector.load %arg3[%c0_3, %c0_4] : memref<1x128xf32, #tpu.memory_space<vmem>>, vector<1x128xf32>
    %5 = vector.broadcast %4 : vector<1x128xf32> to vector<8x128xf32>
    %6 = arith.addf %3, %5 : vector<8x128xf32>
    %cst_5 = arith.constant 0.000000e+00 : f32
    %7 = vector.broadcast %cst_5 : f32 to vector<8x128xf32>
    %8 = arith.maximumf %6, %7 : vector<8x128xf32>
    %9 = arith.truncf %8 : vector<8x128xf32> to vector<8x128xbf16>
    %c0_6 = arith.constant 0 : index
    %c0_7 = arith.constant 0 : index
    %c0_8 = arith.constant 0 : index
    %10 = vector.load %arg4[%c0_6, %c0_7, %c0_8] : memref<1x128x128xbf16, #tpu.memory_space<vmem>>, vector<1x128x128xbf16>
    %11 = vector.shape_cast %10 : vector<1x128x128xbf16> to vector<128x128xbf16>
    %cst_9 = arith.constant dense<0.000000e+00> : vector<8x128xf32>
    %12 = tpu.matmul %9, %11, %cst_9 {dimension_numbers = #tpu.dot_dimension_numbers<[1], [0], [0], [1], [0, 0, 1, 1], [], []>} : vector<8x128xbf16>, vector<128x128xbf16>, vector<8x128xf32> -> vector<8x128xf32>
    %c0_10 = arith.constant 0 : index
    %c0_11 = arith.constant 0 : index
    %c0_12 = arith.constant 0 : index
    %13 = vector.load %arg5[%c0_10, %c0_11, %c0_12] : memref<1x1x128xf32, #tpu.memory_space<vmem>>, vector<1x1x128xf32>
    %14 = vector.shape_cast %13 : vector<1x1x128xf32> to vector<1x128xf32>
    %15 = vector.broadcast %14 : vector<1x128xf32> to vector<8x128xf32>
    %16 = arith.addf %12, %15 : vector<8x128xf32>
    %cst_13 = arith.constant 0.000000e+00 : f32
    %17 = vector.broadcast %cst_13 : f32 to vector<8x128xf32>
    %18 = arith.maximumf %16, %17 : vector<8x128xf32>
    %19 = arith.truncf %18 : vector<8x128xf32> to vector<8x128xbf16>
    %c0_14 = arith.constant 0 : index
    %c0_15 = arith.constant 0 : index
    %20 = vector.load %arg6[%c0_14, %c0_15] : memref<128x128xbf16, #tpu.memory_space<vmem>>, vector<128x128xbf16>
    %cst_16 = arith.constant dense<0.000000e+00> : vector<8x128xf32>
    %21 = tpu.matmul %19, %20, %cst_16 {dimension_numbers = #tpu.dot_dimension_numbers<[1], [0], [0], [1], [0, 0, 1, 1], [], []>} : vector<8x128xbf16>, vector<128x128xbf16>, vector<8x128xf32> -> vector<8x128xf32>
    %c0_17 = arith.constant 0 : index
    %c0_18 = arith.constant 0 : index
    %22 = vector.load %arg7[%c0_17, %c0_18] : memref<1x128xf32, #tpu.memory_space<vmem>>, vector<1x128xf32>
    %23 = vector.broadcast %22 : vector<1x128xf32> to vector<8x128xf32>
    %24 = arith.addf %21, %23 : vector<8x128xf32>
    %cst_19 = arith.constant dense<0xFF800000> : vector<8xf32>
    %25 = vector.multi_reduction <maximumf>, %24, %cst_19 [1] : vector<8x128xf32> to vector<8xf32>
    %26 = vector.shape_cast %25 : vector<8xf32> to vector<8x1xf32>
    %27 = vector.broadcast %26 : vector<8x1xf32> to vector<8x128xf32>
    %28 = arith.subf %24, %27 : vector<8x128xf32>
    %29 = math.exp %28 : vector<8x128xf32>
    %cst_20 = arith.constant dense<0.000000e+00> : vector<8xf32>
    %30 = vector.multi_reduction <add>, %29, %cst_20 [1] : vector<8x128xf32> to vector<8xf32>
    %31 = vector.shape_cast %30 : vector<8xf32> to vector<8x1xf32>
    %32 = vector.broadcast %31 : vector<8x1xf32> to vector<8x128xf32>
    %33 = arith.divf %29, %32 : vector<8x128xf32>
    %c0_21 = arith.constant 0 : index
    %c0_22 = arith.constant 0 : index
    %34 = vector.load %arg8[%c0_21, %c0_22] : memref<8x128xf32, #tpu.memory_space<vmem>>, vector<8x128xf32>
    tpu.vector_store %arg8[%c0_21, %c0_22], %33 {strides = array<i32>} : memref<8x128xf32, #tpu.memory_space<vmem>>, vector<8x128xf32>,
    return
  }
  func.func @transform_0(%arg0: i32) -> (i32, i32) {
    %c0_i32 = arith.constant 0 : i32
    %c0_i32_0 = arith.constant 0 : i32
    return %arg0, %c0_i32 : i32, i32
  }
  func.func @transform_1(%arg0: i32) -> (i32, i32) {
    %c0_i32 = arith.constant 0 : i32
    %c0_i32_0 = arith.constant 0 : i32
    %c0_i32_1 = arith.constant 0 : i32
    return %c0_i32, %c0_i32_0 : i32, i32
  }
  func.func @transform_2(%arg0: i32) -> (i32, i32) {
    %c0_i32 = arith.constant 0 : i32
    %c0_i32_0 = arith.constant 0 : i32
    %c0_i32_1 = arith.constant 0 : i32
    return %c0_i32, %c0_i32_0 : i32, i32
  }
  func.func @transform_3(%arg0: i32) -> (i32, i32, i32) {
    %c0_i32 = arith.constant 0 : i32
    %c0_i32_0 = arith.constant 0 : i32
    %c0_i32_1 = arith.constant 0 : i32
    %c0_i32_2 = arith.constant 0 : i32
    return %c0_i32, %c0_i32_0, %c0_i32_1 : i32, i32, i32
  }
  func.func @transform_4(%arg0: i32) -> (i32, i32, i32) {
    %c0_i32 = arith.constant 0 : i32
    %c0_i32_0 = arith.constant 0 : i32
    %c0_i32_1 = arith.constant 0 : i32
    %c0_i32_2 = arith.constant 0 : i32
    return %c0_i32, %c0_i32_0, %c0_i32_1 : i32, i32, i32
  }
  func.func @transform_5(%arg0: i32) -> (i32, i32) {
    %c0_i32 = arith.constant 0 : i32
    %c0_i32_0 = arith.constant 0 : i32
    %c0_i32_1 = arith.constant 0 : i32
    return %c0_i32, %c0_i32_0 : i32, i32
  }
  func.func @transform_6(%arg0: i32) -> (i32, i32) {
    %c0_i32 = arith.constant 0 : i32
    %c0_i32_0 = arith.constant 0 : i32
    %c0_i32_1 = arith.constant 0 : i32
    return %c0_i32, %c0_i32_0 : i32, i32
  }
  func.func @transform_7(%arg0: i32) -> (i32, i32) {
    %c0_i32 = arith.constant 0 : i32
    %c0_i32_0 = arith.constant 0 : i32
    return %arg0, %c0_i32 : i32, i32
  }
}

</mosaic_0001>

<bundles_post_ra>
// kernel: tpu_custom_call.1
= control target key start
LH: loop header
LB: loop body
LE: loop exit
PB: predicated region body
PF: predicated region fallthrough
CT: control target
= control target key end

     0   :  { %12 = vsyncpa [#allocation3], 0  ;;  %s712_s0 = inlined_call_operand.hbm [shape: f32[8,128], index: 0, kind: input, shape index: {}]   ;;  %s713_s1 = inlined_call_operand.hbm [shape: bf16[128,128], index: 1, kind: input, shape index: {}]   ;;  %s714_s2 = inlined_call_operand.vmem [shape: f32[1,128], index: 2, kind: input, shape index: {}]   ;;  %s715_s3 = inlined_call_operand.hbm [shape: bf16[1,128,128], index: 3, kind: input, shape index: {}]   ;;  %s716_s4 = inlined_call_operand.vmem [shape: f32[1,1,128], index: 4, kind: input, shape index: {}]   ;;  %s717_s5 = inlined_call_operand.hbm [shape: bf16[128,128], index: 5, kind: input, shape index: {}]   ;;  %s718_s6 = inlined_call_operand.vmem [shape: f32[1,128], index: 6, kind: input, shape index: {}]   ;;  %s719_s7 = inlined_call_operand.hbm [shape: f32[8,128], index: 7, kind: output, shape index: {}]  }
   0x1   :  { %13 = vsyncpa [#allocation6], 0 }
   0x2   :  { %14 = vsyncpa [#allocation9], 0  ;;  %s31_s26 = sshll.u32 %s713_s1, 4  ;;  %s32_s26 = int_to_ptr.hbm [resolvable:$true] %s31_s26 }
   0x3   :  { %15 = vsyncpa [#allocation4], 0  ;;  %s641_s27 = smov [#allocation5]   ;;  %s21_s8 = sshll.u32 %s712_s0, 4  ;;  %s22_s8 = int_to_ptr.hbm [resolvable:$true] %s21_s8 }
   0x4   :  { %s33_s28 = sshll.u32 %s641_s27, 4  ;;  %s642_s9 = smov 64   ;;  %s34_s28 = int_to_ptr.vmem [resolvable:$true] %s33_s28 }
   0x5   :  { %s643_s10 = smov 4   ;;  %s644_s11 = smov [#allocation2]  }
   0x6   :  { %39 = dma.hbm_to_vmem [thread:$0]  %s32_s26, 1024, %s34_s28, [#allocation6], %s642_s9, %s642_s9, %s643_s10  }
   0x7   :  { %s23_s12 = sshll.u32 %s644_s11, 4  ;;  %s46_s15 = sshll.u32 %s715_s3, 4  ;;  %s24_s12 = int_to_ptr.vmem [resolvable:$true] %s23_s12  ;;  %s47_s15 = int_to_ptr.hbm [resolvable:$true] %s46_s15 }
   0x8   :  { %26 = dma.hbm_to_vmem [thread:$0]  %s22_s8, 128, %s24_s12, [#allocation3]  }
   0x9   :  { %s61_s17 = sshll.u32 %s717_s5, 4  ;;  %s645_s18 = smov [#allocation7]   ;;  %s62_s17 = int_to_ptr.hbm [resolvable:$true] %s61_s17 }
   0xa   :  { %s48_s19 = sshll.u32 %s645_s18, 4  ;;  %s646_s0 = smov [#allocation8]   ;;  %s49_s19 = int_to_ptr.vmem [resolvable:$true] %s48_s19 }
   0xb   :  { %54 = dma.hbm_to_vmem [thread:$0]  %s47_s15, 1024, %s49_s19, [#allocation6], %s642_s9, %s642_s9, %s643_s10  }
   0xc   :  { %s63_s20 = sshll.u32 %s646_s0, 4  ;;  %s64_s20 = int_to_ptr.vmem [resolvable:$true] %s63_s20 }
   0xd   :  { %69 = dma.hbm_to_vmem [thread:$0]  %s62_s17, 1024, %s64_s20, [#allocation9], %s642_s9, %s642_s9, %s643_s10  }
   0xe   :  { %633 = dma.done.wait [#allocation3], 128  }
   0xf   :  { %634 = vsyncadd [#allocation3], 4294967168 }
  0x10   :  { %635 = dma.done.wait [#allocation6], 2048  }
  0x11   :  { %636 = vsyncadd [#allocation6], 4294965248 }
  0x12   :  { %637 = dma.done.wait [#allocation9], 1024  }
  0x13   :  { %638 = vsyncadd [#allocation9], 4294966272  ;;  %v482_v0 = vld [vmem:[#allocation5 + $0x38] sm:$0xff]  ;;  %v481_v1 = vld [vmem:[#allocation5 + $0x30] sm:$0xff]  ;;  %s367_s26 = sshll.u32 %s719_s7, 4  ;;  %s368_s26 = int_to_ptr.hbm [resolvable:$true] %s367_s26 }
  0x14   :  { %158 = vmatpush.bf16.msra.mxu0 %v482_v0  ;;  %v490_v2 = vld [vmem:[#allocation7 + $0x38] sm:$0xff]  ;;  %v489_v3 = vld [vmem:[#allocation7 + $0x30] sm:$0xff]  ;;  %v480_v4 = vld [vmem:[#allocation5 + $0x28] sm:$0xff] }
  0x15   :  { %241 = vmatpush.bf16.msra.mxu1 %v490_v2  ;;  %v488_v5 = vld [vmem:[#allocation7 + $0x28] sm:$0xff]  ;;  %v479_v6 = vld [vmem:[#allocation5 + $0x20] sm:$0xff]  ;;  %v478_v8 = vld [vmem:[#allocation5 + $0x18] sm:$0xff] }
  0x16   :  { %v487_v7 = vld [vmem:[#allocation7 + $0x20] sm:$0xff]  ;;  %v486_v9 = vld [vmem:[#allocation7 + $0x18] sm:$0xff]  ;;  %v477_v10 = vld [vmem:[#allocation5 + $0x10] sm:$0xff] }
  0x17   :  { %v485_v11 = vld [vmem:[#allocation7 + $0x10] sm:$0xff]  ;;  %v476_v12 = vld [vmem:[#allocation5 + $0x8] sm:$0xff]  ;;  %v475_v13 = vld [vmem:[#allocation5] sm:$0xff] }
  0x18   :  { %159 = vmatpush.bf16.msra.mxu0 %v481_v1  ;;  %v88_v14 = vld [vmem:[#allocation2] sm:$0xff]  ;;  %v484_v16 = vld [vmem:[#allocation7 + $0x8] sm:$0xff]  ;;  %v483_v17 = vld [vmem:[#allocation7] sm:$0xff] }
  0x19   :  { %242 = vmatpush.bf16.msra.mxu1 %v489_v3  ;;  %v89_v15 = vpack.c.bf16 %v88_v14, %v88_v14  ;;  %v498_v18 = vld [vmem:[#allocation8 + $0x38] sm:$0xff]  ;;  %v497_v19 = vld [vmem:[#allocation8 + $0x30] sm:$0xff]  ;;  %v496_v20 = vld [vmem:[#allocation8 + $0x28] sm:$0xff] }
  0x1a   :  { %324 = vmatpush.bf16.msra.mxu2 %v498_v18  ;;  %v495_v21 = vld [vmem:[#allocation8 + $0x20] sm:$0xff]  ;;  %v494_v22 = vld [vmem:[#allocation8 + $0x18] sm:$0xff]  ;;  %v493_v23 = vld [vmem:[#allocation8 + $0x10] sm:$0xff] }
  0x1b   :  { %v506_v24 = vld [vmem:[%s714_s2] ss:$0 sm:$0xff]  ;;  %v492_v30 = vld [vmem:[#allocation8 + $0x8] sm:$0xff]  ;;  %v491_v31 = vld [vmem:[#allocation8] sm:$0xff] }
  0x1c   :  { %160 = vmatpush.bf16.msra.mxu0 %v480_v4  ;;  %v507_v32 = vld [vmem:[%s716_s4] ss:$0 sm:$0xff]  ;;  %s647_s4 = smov [#allocation10]  }
  0x1d   :  { %243 = vmatpush.bf16.msra.mxu1 %v488_v5  ;;  %v508_v38 = vld [vmem:[%s718_s6] ss:$0 sm:$0xff]  ;;  %s365_s6 = sshll.u32 %s647_s4, 4  ;;  %s366_s6 = int_to_ptr.vmem [resolvable:$true] %s365_s6 }
  0x1e   :  { %325 = vmatpush.bf16.msra.mxu2 %v497_v19 }
  0x20   :  { %161 = vmatpush.bf16.msra.mxu0 %v479_v6 }
  0x21   :  { %244 = vmatpush.bf16.msra.mxu1 %v487_v7 }
  0x22   :  { %326 = vmatpush.bf16.msra.mxu2 %v496_v20 }
  0x24   :  { %162 = vmatpush.bf16.msra.mxu0 %v478_v8 }
  0x25   :  { %245 = vmatpush.bf16.msra.mxu1 %v486_v9 }
  0x26   :  { %327 = vmatpush.bf16.msra.mxu2 %v495_v21 }
  0x28   :  { %163 = vmatpush.bf16.msra.mxu0 %v477_v10 }
  0x29   :  { %246 = vmatpush.bf16.msra.mxu1 %v485_v11 }
  0x2a   :  { %328 = vmatpush.bf16.msra.mxu2 %v494_v22 }
  0x2c   :  { %164 = vmatpush.bf16.msra.mxu0 %v476_v12 }
  0x2d   :  { %247 = vmatpush.bf16.msra.mxu1 %v484_v16 }
  0x2e   :  { %329 = vmatpush.bf16.msra.mxu2 %v493_v23 }
  0x30   :  { %165 = vmatpush.bf16.msra.mxu0 %v475_v13 }
  0x31   :  { %248 = vmatpush.bf16.msra.mxu1 %v483_v17 }
  0x32   :  { %330 = vmatpush.bf16.msra.mxu2 %v492_v30 }
  0x33   :  { %166 = vmatmul.bf16.vlgmr.msra.gmra.mxu0 %v89_v15 }
  0x36   :  { %331 = vmatpush.bf16.msra.mxu2 %v491_v31 }
  0xb0   :  { %v167_v25 = vpop.f32.mrf.mxu0 }
  0xb1   :  { %v168_v26 = vadd.f32 %v506_v24, %v167_v25 }
  0xb3   :  { %v171_v27 = vmax.f32 %v168_v26, 0.0 }
  0xb5   :  { %v172_v28 = vpack.c.bf16 %v171_v27, %v171_v27 }
  0xb7   :  { %249 = vmatmul.bf16.vlgmr.msra.gmra.mxu1 %v172_v28 }
  0xb8   :  { %v169_v29 = vpop.f32.mrf.mxu0 }
 0x134   :  { %v250_v33 = vpop.f32.mrf.mxu1 }
 0x135   :  { %v251_v34 = vadd.f32 %v507_v32, %v250_v33 }
 0x137   :  { %v254_v35 = vmax.f32 %v251_v34, 0.0 }
 0x139   :  { %v255_v36 = vpack.c.bf16 %v254_v35, %v254_v35 }
 0x13b   :  { %332 = vmatmul.bf16.vlgmr.msra.gmra.mxu2 %v255_v36 }
 0x13c   :  { %v252_v37 = vpop.f32.mrf.mxu1 }
 0x1be   :  { %v333_v39 = vpop.f32.mrf.mxu2 }
 0x1bf   :  { %v334_v40 = vadd.f32 %v508_v38, %v333_v39 }
 0x1c1   :  { %337 = vmax.xlane.f32.xlu0 %v334_v40 }
 0x1c6   :  { %v335_v41 = vpop.f32.mrf.mxu2 }
 0x234   :  { %v338_v42 = vpop.xlane.xlu0 %337 }
 0x235   :  { %v339_v43 = vsub.f32 %v334_v40, %v338_v42 }
 0x237   :  { %v340_v44 = vmul.f32 1.442695, %v339_v43 }
 0x239   :  { %509 = vpow2.f32 %v340_v44 }
 0x23f   :  { %v510_v45 = vpop.eup %509 }
 0x240   :  { %342 = vadd.xlane.f32.xlu0 %v510_v45 }
 0x2b3   :  { %v343_v46 = vpop.xlane.xlu0 %342 }
 0x2b4   :  { %511 = vrcp.f32 %v343_v46  ;;  %v355_v50 = vand.u32 2147483648, %v343_v46  ;;  %v353_v52 = vand.u32 2147483647, %v343_v46  ;;  %vm349_vm1 = vweird.f32 %v343_v46 }
 0x2b6   :  { %v356_v54 = vor.u32 1.1754944e-38, %v355_v50  ;;  %vm354_vm3 = vcmp.eq.f32.partialorder %v353_v52, 8.507059e+37 }
 0x2ba   :  { %v512_v47 = vpop.eup %511 }
 0x2bb   :  { %v345_v48 = vmul.f32 %v512_v47, %v343_v46  ;;  %vm350_vm0 = vweird.f32 %v512_v47 }
 0x2bc   :  { %vm351_vm2 = vmor %vm349_vm1, %vm350_vm0 }
 0x2bd   :  { %v346_v49 = vsub.f32 1.0, %v345_v48 }
 0x2bf   :  { %v347_v51 = vmul.f32 %v512_v47, %v346_v49 }
 0x2c1   :  { %v348_v53 = vadd.f32 %v512_v47, %v347_v51 }
 0x2c3   :  { %v352_v55 = vsel %vm351_vm2, %v512_v47, %v348_v53 }
 0x2c4   :  { %v357_v56 = vsel %vm354_vm3, %v356_v54, %v352_v55 }
 0x2c5   :  { %v358_v57 = vmul.f32 %v510_v45, %v357_v56 }
 0x2c7   :  { %359 = vst [vmem:[#allocation10] sm:$0xff] %v358_v57 }
 0x2c8   :  { %370 = dma.vmem_to_hbm [thread:$0]  %s366_s6, 128, %s368_s26, [#allocation4]  }
 0x2c9   :  { %639 = dma.done.wait [#allocation4], 128  }
 0x2ca   :  { %640 = vsyncadd [#allocation4], 4294967168 }
 0x2cb   :  { %375 = vsyncpa [#allocation3], 1 }
 0x2cc   :  { %376 = vsyncpa [#allocation6], 1 }
 0x2cd   :  { %377 = vsyncpa [#allocation9], 1 }
 0x2ce   :  { %378 = vsyncpa [#allocation4], 1 }

// kernel: tpu_custom_call.1
= control target key start
LH: loop header
LB: loop body
LE: loop exit
PB: predicated region body
PF: predicated region fallthrough
CT: control target
= control target key end

     0   :  { %12 = vsyncpa [#allocation3], 0  ;;  %s712_s0 = inlined_call_operand.hbm [shape: f32[8,128], index: 0, kind: input, shape index: {}]   ;;  %s713_s1 = inlined_call_operand.hbm [shape: bf16[128,128], index: 1, kind: input, shape index: {}]   ;;  %s714_s2 = inlined_call_operand.vmem [shape: f32[1,128], index: 2, kind: input, shape index: {}]   ;;  %s715_s3 = inlined_call_operand.hbm [shape: bf16[1,128,128], index: 3, kind: input, shape index: {}]   ;;  %s716_s4 = inlined_call_operand.vmem [shape: f32[1,1,128], index: 4, kind: input, shape index: {}]   ;;  %s717_s5 = inlined_call_operand.hbm [shape: bf16[128,128], index: 5, kind: input, shape index: {}]   ;;  %s718_s6 = inlined_call_operand.vmem [shape: f32[1,128], index: 6, kind: input, shape index: {}]   ;;  %s719_s7 = inlined_call_operand.hbm [shape: f32[8,128], index: 7, kind: output, shape index: {}]  }
   0x1   :  { %13 = vsyncpa [#allocation6], 0 }
   0x2   :  { %14 = vsyncpa [#allocation9], 0  ;;  %s31_s26 = sshll.u32 %s713_s1, 4  ;;  %s32_s26 = int_to_ptr.hbm [resolvable:$true] %s31_s26 }
   0x3   :  { %15 = vsyncpa [#allocation4], 0  ;;  %s641_s27 = smov [#allocation5]   ;;  %s21_s8 = sshll.u32 %s712_s0, 4  ;;  %s22_s8 = int_to_ptr.hbm [resolvable:$true] %s21_s8 }
   0x4   :  { %s33_s28 = sshll.u32 %s641_s27, 4  ;;  %s642_s9 = smov 64   ;;  %s34_s28 = int_to_ptr.vmem [resolvable:$true] %s33_s28 }
   0x5   :  { %s643_s10 = smov 4   ;;  %s644_s11 = smov [#allocation2]  }
   0x6   :  { %39 = dma.hbm_to_vmem [thread:$0]  %s32_s26, 1024, %s34_s28, [#allocation6], %s642_s9, %s642_s9, %s643_s10  }
   0x7   :  { %s23_s12 = sshll.u32 %s644_s11, 4  ;;  %s46_s15 = sshll.u32 %s715_s3, 4  ;;  %s24_s12 = int_to_ptr.vmem [resolvable:$true] %s23_s12  ;;  %s47_s15 = int_to_ptr.hbm [resolvable:$true] %s46_s15 }
   0x8   :  { %26 = dma.hbm_to_vmem [thread:$0]  %s22_s8, 128, %s24_s12, [#allocation3]  }
   0x9   :  { %s61_s17 = sshll.u32 %s717_s5, 4  ;;  %s645_s18 = smov [#allocation7]   ;;  %s62_s17 = int_to_ptr.hbm [resolvable:$true] %s61_s17 }
   0xa   :  { %s48_s19 = sshll.u32 %s645_s18, 4  ;;  %s646_s0 = smov [#allocation8]   ;;  %s49_s19 = int_to_ptr.vmem [resolvable:$true] %s48_s19 }
   0xb   :  { %54 = dma.hbm_to_vmem [thread:$0]  %s47_s15, 1024, %s49_s19, [#allocation6], %s642_s9, %s642_s9, %s643_s10  }
   0xc   :  { %s63_s20 = sshll.u32 %s646_s0, 4  ;;  %s64_s20 = int_to_ptr.vmem [resolvable:$true] %s63_s20 }
   0xd   :  { %69 = dma.hbm_to_vmem [thread:$0]  %s62_s17, 1024, %s64_s20, [#allocation9], %s642_s9, %s642_s9, %s643_s10  }
   0xe   :  { %633 = dma.done.wait [#allocation3], 128  }
   0xf   :  { %634 = vsyncadd [#allocation3], 4294967168 }
  0x10   :  { %635 = dma.done.wait [#allocation6], 2048  }
  0x11   :  { %636 = vsyncadd [#allocation6], 4294965248 }
  0x12   :  { %637 = dma.done.wait [#allocation9], 1024  }
  0x13   :  { %638 = vsyncadd [#allocation9], 4294966272  ;;  %v482_v0 = vld [vmem:[#allocation5 + $0x38] sm:$0xff]  ;;  %v481_v1 = vld [vmem:[#allocation5 + $0x30] sm:$0xff]  ;;  %s367_s26 = sshll.u32 %s719_s7, 4  ;;  %s368_s26 = int_to_ptr.hbm [resolvable:$true] %s367_s26 }
  0x14   :  { %158 = vmatpush.bf16.msra.mxu0 %v482_v0  ;;  %v490_v2 = vld [vmem:[#allocation7 + $0x38] sm:$0xff]  ;;  %v489_v3 = vld [vmem:[#allocation7 + $0x30] sm:$0xff]  ;;  %v480_v4 = vld [vmem:[#allocation5 + $0x28] sm:$0xff] }
  0x15   :  { %241 = vmatpush.bf16.msra.mxu1 %v490_v2  ;;  %v488_v5 = vld [vmem:[#allocation7 + $0x28] sm:$0xff]  ;;  %v479_v6 = vld [vmem:[#allocation5 + $0x20] sm:$0xff]  ;;  %v478_v8 = vld [vmem:[#allocation5 + $0x18] sm:$0xff] }
  0x16   :  { %v487_v7 = vld [vmem:[#allocation7 + $0x20] sm:$0xff]  ;;  %v486_v9 = vld [vmem:[#allocation7 + $0x18] sm:$0xff]  ;;  %v477_v10 = vld [vmem:[#allocation5 + $0x10] sm:$0xff] }
  0x17   :  { %v485_v11 = vld [vmem:[#allocation7 + $0x10] sm:$0xff]  ;;  %v476_v12 = vld [vmem:[#allocation5 + $0x8] sm:$0xff]  ;;  %v475_v13 = vld [vmem:[#allocation5] sm:$0xff] }
  0x18   :  { %159 = vmatpush.bf16.msra.mxu0 %v481_v1  ;;  %v88_v14 = vld [vmem:[#allocation2] sm:$0xff]  ;;  %v484_v16 = vld [vmem:[#allocation7 + $0x8] sm:$0xff]  ;;  %v483_v17 = vld [vmem:[#allocation7] sm:$0xff] }
  0x19   :  { %242 = vmatpush.bf16.msra.mxu1 %v489_v3  ;;  %v89_v15 = vpack.c.bf16 %v88_v14, %v88_v14  ;;  %v498_v18 = vld [vmem:[#allocation8 + $0x38] sm:$0xff]  ;;  %v497_v19 = vld [vmem:[#allocation8 + $0x30] sm:$0xff]  ;;  %v496_v20 = vld [vmem:[#allocation8 + $0x28] sm:$0xff] }
  0x1a   :  { %324 = vmatpush.bf16.msra.mxu2 %v498_v18  ;;  %v495_v21 = vld [vmem:[#allocation8 + $0x20] sm:$0xff]  ;;  %v494_v22 = vld [vmem:[#allocation8 + $0x18] sm:$0xff]  ;;  %v493_v23 = vld [vmem:[#allocation8 + $0x10] sm:$0xff] }
  0x1b   :  { %v506_v24 = vld [vmem:[%s714_s2] ss:$0 sm:$0xff]  ;;  %v492_v30 = vld [vmem:[#allocation8 + $0x8] sm:$0xff]  ;;  %v491_v31 = vld [vmem:[#allocation8] sm:$0xff] }
  0x1c   :  { %160 = vmatpush.bf16.msra.mxu0 %v480_v4  ;;  %v507_v32 = vld [vmem:[%s716_s4] ss:$0 sm:$0xff]  ;;  %s647_s4 = smov [#allocation10]  }
  0x1d   :  { %243 = vmatpush.bf16.msra.mxu1 %v488_v5  ;;  %v508_v38 = vld [vmem:[%s718_s6] ss:$0 sm:$0xff]  ;;  %s365_s6 = sshll.u32 %s647_s4, 4  ;;  %s366_s6 = int_to_ptr.vmem [resolvable:$true] %s365_s6 }
  0x1e   :  { %325 = vmatpush.bf16.msra.mxu2 %v497_v19 }
  0x20   :  { %161 = vmatpush.bf16.msra.mxu0 %v479_v6 }
  0x21   :  { %244 = vmatpush.bf16.msra.mxu1 %v487_v7 }
  0x22   :  { %326 = vmatpush.bf16.msra.mxu2 %v496_v20 }
  0x24   :  { %162 = vmatpush.bf16.msra.mxu0 %v478_v8 }
  0x25   :  { %245 = vmatpush.bf16.msra.mxu1 %v486_v9 }
  0x26   :  { %327 = vmatpush.bf16.msra.mxu2 %v495_v21 }
  0x28   :  { %163 = vmatpush.bf16.msra.mxu0 %v477_v10 }
  0x29   :  { %246 = vmatpush.bf16.msra.mxu1 %v485_v11 }
  0x2a   :  { %328 = vmatpush.bf16.msra.mxu2 %v494_v22 }
  0x2c   :  { %164 = vmatpush.bf16.msra.mxu0 %v476_v12 }
  0x2d   :  { %247 = vmatpush.bf16.msra.mxu1 %v484_v16 }
  0x2e   :  { %329 = vmatpush.bf16.msra.mxu2 %v493_v23 }
  0x30   :  { %165 = vmatpush.bf16.msra.mxu0 %v475_v13 }
  0x31   :  { %248 = vmatpush.bf16.msra.mxu1 %v483_v17 }
  0x32   :  { %330 = vmatpush.bf16.msra.mxu2 %v492_v30 }
  0x33   :  { %166 = vmatmul.bf16.vlgmr.msra.gmra.mxu0 %v89_v15 }
  0x36   :  { %331 = vmatpush.bf16.msra.mxu2 %v491_v31 }
  0xb0   :  { %v167_v25 = vpop.f32.mrf.mxu0 }
  0xb1   :  { %v168_v26 = vadd.f32 %v506_v24, %v167_v25 }
  0xb3   :  { %v171_v27 = vmax.f32 %v168_v26, 0.0 }
  0xb5   :  { %v172_v28 = vpack.c.bf16 %v171_v27, %v171_v27 }
  0xb7   :  { %249 = vmatmul.bf16.vlgmr.msra.gmra.mxu1 %v172_v28 }
  0xb8   :  { %v169_v29 = vpop.f32.mrf.mxu0 }
 0x134   :  { %v250_v33 = vpop.f32.mrf.mxu1 }
 0x135   :  { %v251_v34 = vadd.f32 %v507_v32, %v250_v33 }
 0x137   :  { %v254_v35 = vmax.f32 %v251_v34, 0.0 }
 0x139   :  { %v255_v36 = vpack.c.bf16 %v254_v35, %v254_v35 }
 0x13b   :  { %332 = vmatmul.bf16.vlgmr.msra.gmra.mxu2 %v255_v36 }
 0x13c   :  { %v252_v37 = vpop.f32.mrf.mxu1 }
 0x1be   :  { %v333_v39 = vpop.f32.mrf.mxu2 }
 0x1bf   :  { %v334_v40 = vadd.f32 %v508_v38, %v333_v39 }
 0x1c1   :  { %337 = vmax.xlane.f32.xlu0 %v334_v40 }
 0x1c6   :  { %v335_v41 = vpop.f32.mrf.mxu2 }
 0x234   :  { %v338_v42 = vpop.xlane.xlu0 %337 }
 0x235   :  { %v339_v43 = vsub.f32 %v334_v40, %v338_v42 }
 0x237   :  { %v340_v44 = vmul.f32 1.442695, %v339_v43 }
 0x239   :  { %509 = vpow2.f32 %v340_v44 }
 0x23f   :  { %v510_v45 = vpop.eup %509 }
 0x240   :  { %342 = vadd.xlane.f32.xlu0 %v510_v45 }
 0x2b3   :  { %v343_v46 = vpop.xlane.xlu0 %342 }
 0x2b4   :  { %511 = vrcp.f32 %v343_v46  ;;  %v355_v50 = vand.u32 2147483648, %v343_v46  ;;  %v353_v52 = vand.u32 2147483647, %v343_v46  ;;  %vm349_vm1 = vweird.f32 %v343_v46 }
 0x2b6   :  { %v356_v54 = vor.u32 1.1754944e-38, %v355_v50  ;;  %vm354_vm3 = vcmp.eq.f32.partialorder %v353_v52, 8.507059e+37 }
 0x2ba   :  { %v512_v47 = vpop.eup %511 }
 0x2bb   :  { %v345_v48 = vmul.f32 %v512_v47, %v343_v46  ;;  %vm350_vm0 = vweird.f32 %v512_v47 }
 0x2bc   :  { %vm351_vm2 = vmor %vm349_vm1, %vm350_vm0 }
 0x2bd   :  { %v346_v49 = vsub.f32 1.0, %v345_v48 }
 0x2bf   :  { %v347_v51 = vmul.f32 %v512_v47, %v346_v49 }
 0x2c1   :  { %v348_v53 = vadd.f32 %v512_v47, %v347_v51 }
 0x2c3   :  { %v352_v55 = vsel %vm351_vm2, %v512_v47, %v348_v53 }
 0x2c4   :  { %v357_v56 = vsel %vm354_vm3, %v356_v54, %v352_v55 }
 0x2c5   :  { %v358_v57 = vmul.f32 %v510_v45, %v357_v56 }
 0x2c7   :  { %359 = vst [vmem:[#allocation10] sm:$0xff] %v358_v57 }
 0x2c8   :  { %370 = dma.vmem_to_hbm [thread:$0]  %s366_s6, 128, %s368_s26, [#allocation4]  }
 0x2c9   :  { %639 = dma.done.wait [#allocation4], 128  }
 0x2ca   :  { %640 = vsyncadd [#allocation4], 4294967168 }
 0x2cb   :  { %375 = vsyncpa [#allocation3], 1 }
 0x2cc   :  { %376 = vsyncpa [#allocation6], 1 }
 0x2cd   :  { %377 = vsyncpa [#allocation9], 1 }
 0x2ce   :  { %378 = vsyncpa [#allocation4], 1 }

</bundles_post_ra>
